<compile_context>
chip_gen: v7x
topology: tpu7x:2x2x1
jax: 0.10.0
libtpu: 0.0.40
codegen_flags: <defaults>
</compile_context>

<pallas_src>
import jax
import jax.numpy as jnp
from jax.experimental import pallas as pl
from jax.experimental.pallas import tpu as pltpu


NEG_SLOPE = 0.2
IN_FEATURES = 113
HIDDEN = 8

# Rows of x per grid step. At 8192 rows the lane-padded x block is 4 MiB and the
# lane-padded out block another 4 MiB; double-buffered ~16 MiB total.
MAX_TILE_ROWS = 8192
# Above this many rows, force an even number of grid steps (v7x 2-TC balance;
# no-op on single-TC v5e/v6e).
TWO_CORE_SPLIT_ROWS = 4096
VMEM_LIMIT_BYTES = 32 * 1024 * 1024


def _cdiv(a, b):
    return -(-a // b)


def _round_up(n, m):
    return _cdiv(n, m) * m


def _choose_tiling(batch):
    # Row tiles are multiples of 16 so f32 and bf16 x use the same specs.
    b = _round_up(max(batch, 16), 16)
    n_steps = _cdiv(b, MAX_TILE_ROWS)
    if b > TWO_CORE_SPLIT_ROWS and n_steps % 2 == 1:
        n_steps += 1
    tile = _round_up(_cdiv(b, n_steps), 16)
    return tile, tile * n_steps, n_steps


def classifier_kernel(x_ref, w1_ref, b1_ref, w2_ref, b2_ref, o_ref):
    # x tile: (TB, 113); weights/biases are VMEM-resident across grid steps.
    x = x_ref[...]

    # Linear(113 -> 8); f32 accumulation regardless of x/w1 dtype (f32 or bf16).
    h = jnp.dot(x, w1_ref[...],
                preferred_element_type=jnp.float32,
                precision=jax.lax.Precision.HIGHEST)
    h = h + b1_ref[...]                                   # (TB, 8) + (1, 8)

    # LeakyReLU(0.2): single mul + max on the VPU.
    h = jnp.maximum(h, NEG_SLOPE * h)

    # Folded softmax head: w2_ref = 0.5*[-(w2[:,1]-w2[:,0]), +(w2[:,1]-w2[:,0])]
    # (same fold for the bias), so t = 0.5*[l0-l1, l1-l0] and
    # softmax([l0, l1]) == 0.5*(1 + tanh(t)) exactly.
    t = jnp.dot(h, w2_ref[...],
                preferred_element_type=jnp.float32,
                precision=jax.lax.Precision.HIGHEST)
    t = t + b2_ref[...]                                    # (TB, 2) + (1, 2)
    o_ref[...] = (0.5 + 0.5 * jnp.tanh(t)).astype(o_ref.dtype)


@jax.jit
def classifier_forward(x, w1, b1, w2, b2):
    B, F = x.shape
    assert F == IN_FEATURES

    # Fold the 2-class head into +/- half-logit-difference columns (tiny (8,2)/(1,2)
    # XLA ops, negligible).
    w2d = 0.5 * (w2[:, 1:2] - w2[:, 0:1])            # (8, 1)
    b2d = 0.5 * (b2[:, 1:2] - b2[:, 0:1])            # (1, 1)
    w2pm = jnp.concatenate([-w2d, w2d], axis=1)      # (8, 2)
    b2pm = jnp.concatenate([-b2d, b2d], axis=1)      # (1, 2)

    # Stream x in its own dtype (bf16 at the source halves HBM read traffic);
    # match w1 to it (tiny cast) so the MXU takes the packed path.
    w1m = w1.astype(x.dtype)

    tb, b_padded, n_steps = _choose_tiling(B)
    if b_padded != B:
        x = jnp.pad(x, ((0, b_padded - B), (0, 0)))

    out = pl.pallas_call(
        classifier_kernel,
        out_shape=jax.ShapeDtypeStruct((b_padded, 2), jnp.float32),
        grid=(n_steps,),
        in_specs=[
            pl.BlockSpec((tb, IN_FEATURES), lambda i: (i, 0)),      # x: streamed
            pl.BlockSpec((IN_FEATURES, HIDDEN), lambda i: (0, 0)),  # w1: resident
            pl.BlockSpec((1, HIDDEN), lambda i: (0, 0)),            # b1: resident
            pl.BlockSpec((HIDDEN, 2), lambda i: (0, 0)),            # +/- head weights
            pl.BlockSpec((1, 2), lambda i: (0, 0)),                 # +/- head bias
        ],
        out_specs=pl.BlockSpec((tb, 2), lambda i: (i, 0)),
        compiler_params=pltpu.CompilerParams(
            dimension_semantics=("parallel",),
            vmem_limit_bytes=VMEM_LIMIT_BYTES,
        ),
    )(x, w1m, b1, w2pm, b2pm)

    return out[:B]


def init_params(key):
    # Deterministic init mimicking PyTorch nn.Linear default:
    # U(-1/sqrt(fan_in), 1/sqrt(fan_in)) for both weight and bias.
    k1, k2, k3, k4 = jax.random.split(key, 4)
    bound1 = 1.0 / jnp.sqrt(float(IN_FEATURES))
    bound2 = 1.0 / jnp.sqrt(float(HIDDEN))
    w1 = jax.random.uniform(k1, (IN_FEATURES, HIDDEN), jnp.float32, -bound1, bound1)
    b1 = jax.random.uniform(k2, (1, HIDDEN), jnp.float32, -bound1, bound1)
    w2 = jax.random.uniform(k3, (HIDDEN, 2), jnp.float32, -bound2, bound2)
    b2 = jax.random.uniform(k4, (1, 2), jnp.float32, -bound2, bound2)
    return w1, b1, w2, b2


def reference_forward(x, w1, b1, w2, b2):
    # Pure-JAX reference (matches the PyTorch module's math).
    h = jnp.dot(x, w1, precision=jax.lax.Precision.HIGHEST) + b1
    h = jnp.where(h >= 0, h, NEG_SLOPE * h)
    logits = jnp.dot(h, w2, precision=jax.lax.Precision.HIGHEST) + b2
    return jax.nn.softmax(logits, axis=1)


if __name__ == "__main__":
    key = jax.random.PRNGKey(0)
    k_x1, k_x2, k_p = jax.random.split(key, 3)

    w1, b1, w2, b2 = init_params(k_p)

    # --- small batch (single grid step) ---
    B1 = 8
    x1 = jax.random.normal(k_x1, (B1, IN_FEATURES), jnp.float32)
    out1 = jax.block_until_ready(classifier_forward(x1, w1, b1, w2, b2))
    ref1 = reference_forward(x1, w1, b1, w2, b2)
    assert out1.shape == (B1, 2)
    assert jnp.allclose(out1, ref1, atol=1e-5, rtol=1e-5)
    assert jnp.allclose(jnp.sum(out1, axis=1), jnp.ones((B1,)), atol=1e-5)

    # --- larger batch: even multi-step grid (v7x balance) + tail padding ---
    B2 = 5000
    x2 = jax.random.normal(k_x2, (B2, IN_FEATURES), jnp.float32)
    out2 = jax.block_until_ready(classifier_forward(x2, w1, b1, w2, b2))
    ref2 = reference_forward(x2, w1, b1, w2, b2)
    assert out2.shape == (B2, 2)
    assert jnp.allclose(out2, ref2, atol=1e-5, rtol=1e-5)
    assert jnp.allclose(jnp.sum(out2, axis=1), jnp.ones((B2,)), atol=1e-5)

    # --- bf16-at-source path (halves HBM read traffic; f32 accumulation) ---
    x2_bf = x2.astype(jnp.bfloat16)
    out_bf = jax.block_until_ready(classifier_forward(x2_bf, w1, b1, w2, b2))
    ref_bf = reference_forward(x2_bf.astype(jnp.float32),
                               w1.astype(jnp.bfloat16).astype(jnp.float32),
                               b1, w2, b2)
    assert out_bf.shape == (B2, 2)
    assert jnp.allclose(out_bf, ref_bf, atol=1e-3)

    print("KERNEL_OK")
</pallas_src>

<mosaic_0001>
module attributes {stable_mosaic.version = 11 : i64} {
  func.func @classifier_kernel(%arg0: i32, %arg1: memref<16x113xf32, #tpu.memory_space<vmem>>, %arg2: memref<113x8xf32, #tpu.memory_space<vmem>>, %arg3: memref<1x8xf32, #tpu.memory_space<vmem>>, %arg4: memref<8x2xf32, #tpu.memory_space<vmem>>, %arg5: memref<1x2xf32, #tpu.memory_space<vmem>>, %arg6: memref<16x2xf32, #tpu.memory_space<vmem>>) attributes {dimension_semantics = [#tpu.dimension_semantics<parallel>], iteration_bounds = array<i64: 1>, scalar_prefetch = 0 : i64, scratch_operands = 0 : i64, tpu.core_type = #tpu.core_type<tc>, window_params = [{transform_indices = @transform_0, window_bounds = array<i64: 16, 113>}, {pipeline_mode = #tpu.pipeline_mode<synchronous>, transform_indices = @transform_1, window_bounds = array<i64: 113, 8>}, {pipeline_mode = #tpu.pipeline_mode<synchronous>, transform_indices = @transform_2, window_bounds = array<i64: 1, 8>}, {pipeline_mode = #tpu.pipeline_mode<synchronous>, transform_indices = @transform_3, window_bounds = array<i64: 8, 2>}, {pipeline_mode = #tpu.pipeline_mode<synchronous>, transform_indices = @transform_4, window_bounds = array<i64: 1, 2>}, {transform_indices = @transform_5, window_bounds = array<i64: 16, 2>}]} {
    %c0 = arith.constant 0 : index
    %c0_0 = arith.constant 0 : index
    %0 = vector.load %arg1[%c0, %c0_0] : memref<16x113xf32, #tpu.memory_space<vmem>>, vector<16x113xf32>
    %c0_1 = arith.constant 0 : index
    %c0_2 = arith.constant 0 : index
    %1 = vector.load %arg2[%c0_1, %c0_2] : memref<113x8xf32, #tpu.memory_space<vmem>>, vector<113x8xf32>
    %cst = arith.constant dense<0.000000e+00> : vector<16x8xf32>
    %2 = tpu.matmul %0, %1, %cst {dimension_numbers = #tpu.dot_dimension_numbers<[1], [0], [0], [1], [0, 0, 1, 1], [], []>, precision = #tpu.contract_precision<fp32>} : vector<16x113xf32>, vector<113x8xf32>, vector<16x8xf32> -> vector<16x8xf32>
    %c0_3 = arith.constant 0 : index
    %c0_4 = arith.constant 0 : index
    %3 = vector.load %arg3[%c0_3, %c0_4] : memref<1x8xf32, #tpu.memory_space<vmem>>, vector<1x8xf32>
    %4 = vector.broadcast %3 : vector<1x8xf32> to vector<16x8xf32>
    %5 = arith.addf %2, %4 : vector<16x8xf32>
    %cst_5 = arith.constant 2.000000e-01 : f32
    %6 = vector.broadcast %cst_5 : f32 to vector<16x8xf32>
    %7 = arith.mulf %6, %5 : vector<16x8xf32>
    %8 = arith.maximumf %5, %7 : vector<16x8xf32>
    %c0_6 = arith.constant 0 : index
    %c0_7 = arith.constant 0 : index
    %9 = vector.load %arg4[%c0_6, %c0_7] : memref<8x2xf32, #tpu.memory_space<vmem>>, vector<8x2xf32>
    %cst_8 = arith.constant dense<0.000000e+00> : vector<16x2xf32>
    %10 = tpu.matmul %8, %9, %cst_8 {dimension_numbers = #tpu.dot_dimension_numbers<[1], [0], [0], [1], [0, 0, 1, 1], [], []>, precision = #tpu.contract_precision<fp32>} : vector<16x8xf32>, vector<8x2xf32>, vector<16x2xf32> -> vector<16x2xf32>
    %c0_9 = arith.constant 0 : index
    %c0_10 = arith.constant 0 : index
    %11 = vector.load %arg5[%c0_9, %c0_10] : memref<1x2xf32, #tpu.memory_space<vmem>>, vector<1x2xf32>
    %12 = vector.broadcast %11 : vector<1x2xf32> to vector<16x2xf32>
    %13 = arith.addf %10, %12 : vector<16x2xf32>
    %14 = math.tanh %13 : vector<16x2xf32>
    %cst_11 = arith.constant 5.000000e-01 : f32
    %15 = vector.broadcast %cst_11 : f32 to vector<16x2xf32>
    %16 = arith.mulf %15, %14 : vector<16x2xf32>
    %cst_12 = arith.constant 5.000000e-01 : f32
    %17 = vector.broadcast %cst_12 : f32 to vector<16x2xf32>
    %18 = arith.addf %17, %16 : vector<16x2xf32>
    %c0_13 = arith.constant 0 : index
    %c0_14 = arith.constant 0 : index
    %19 = vector.load %arg6[%c0_13, %c0_14] : memref<16x2xf32, #tpu.memory_space<vmem>>, vector<16x2xf32>
    tpu.vector_store %arg6[%c0_13, %c0_14], %18 {strides = array<i32>} : memref<16x2xf32, #tpu.memory_space<vmem>>, vector<16x2xf32>,
    return
  }
  func.func @transform_0(%arg0: i32) -> (i32, i32) {
    %c0_i32 = arith.constant 0 : i32
    %c0_i32_0 = arith.constant 0 : i32
    return %arg0, %c0_i32 : i32, i32
  }
  func.func @transform_1(%arg0: i32) -> (i32, i32) {
    %c0_i32 = arith.constant 0 : i32
    %c0_i32_0 = arith.constant 0 : i32
    %c0_i32_1 = arith.constant 0 : i32
    return %c0_i32, %c0_i32_0 : i32, i32
  }
  func.func @transform_2(%arg0: i32) -> (i32, i32) {
    %c0_i32 = arith.constant 0 : i32
    %c0_i32_0 = arith.constant 0 : i32
    %c0_i32_1 = arith.constant 0 : i32
    return %c0_i32, %c0_i32_0 : i32, i32
  }
  func.func @transform_3(%arg0: i32) -> (i32, i32) {
    %c0_i32 = arith.constant 0 : i32
    %c0_i32_0 = arith.constant 0 : i32
    %c0_i32_1 = arith.constant 0 : i32
    return %c0_i32, %c0_i32_0 : i32, i32
  }
  func.func @transform_4(%arg0: i32) -> (i32, i32) {
    %c0_i32 = arith.constant 0 : i32
    %c0_i32_0 = arith.constant 0 : i32
    %c0_i32_1 = arith.constant 0 : i32
    return %c0_i32, %c0_i32_0 : i32, i32
  }
  func.func @transform_5(%arg0: i32) -> (i32, i32) {
    %c0_i32 = arith.constant 0 : i32
    %c0_i32_0 = arith.constant 0 : i32
    return %arg0, %c0_i32 : i32, i32
  }
}

</mosaic_0001>

<bundles_post_ra>
// kernel: classifier_forward.1
= control target key start
LH: loop header
LB: loop body
LE: loop exit
PB: predicated region body
PF: predicated region fallthrough
CT: control target
= control target key end

     0   :  { %vm44_vm0 = vcmask 924672   ;;  %vm51_vm1 = vcmask 1040384   ;;  %vm738_vm2 = vcmask 64512   ;;  %vm1240_vm3 = vcmask 15360   ;;  %s2130_s1 = inlined_call_operand.vmem [shape: f32[113,8], index: 1, kind: input, shape index: {}]   ;;  %s2131_s0 = inlined_call_operand.vmem [shape: f32[16,113], index: 0, kind: input, shape index: {}]   ;;  %s2132_s3 = inlined_call_operand.vmem [shape: f32[8,2], index: 3, kind: input, shape index: {}]   ;;  %s2133_s2 = inlined_call_operand.vmem [shape: f32[1,8], index: 2, kind: input, shape index: {}]   ;;  %s2134_s4 = inlined_call_operand.vmem [shape: f32[1,2], index: 4, kind: input, shape index: {}]   ;;  %s2135_s5 = inlined_call_operand.vmem [shape: f32[16,2], index: 5, kind: output, shape index: {}]  }
   0x1   :  { %v22_v0 = vld [vmem:[%s2130_s1] sm:$0xff]  ;;  %v23_v1 = vld [vmem:[%s2130_s1 + $0x8] sm:$0xff]  ;;  %v24_v2 = vld [vmem:[%s2130_s1 + $0x10] sm:$0xff] }
   0x2   :  { %v56_v3 = vand.u32 4294901760, %v22_v0  ;;  %v59_v4 = vand.u32 4294901760, %v23_v1  ;;  %v25_v5 = vld [vmem:[%s2130_s1 + $0x18] sm:$0xff]  ;;  %v62_v6 = vand.u32 4294901760, %v24_v2  ;;  %v1838_v7 = vld [vmem:[%s2130_s1 + $0x20] sm:$0xff]  ;;  %v1843_v8 = vld [vmem:[%s2130_s1 + $0x28] sm:$0xff] }
   0x3   :  { %v65_v9 = vand.u32 4294901760, %v25_v5  ;;  %v68_v11 = vand.u32 4294901760, %v1838_v7  ;;  %v71_v12 = vand.u32 4294901760, %v1843_v8  ;;  %v1854_v14 = vld [vmem:[%s2130_s1 + $0x30] sm:$0xff]  ;;  %v1859_v15 = vld [vmem:[%s2130_s1 + $0x38] sm:$0xff]  ;;  %v20_v16 = vld [vmem:[%s2131_s0] sm:$0xff] }
   0x4   :  { %v1845_v10 = vpack.c.bf16 %v59_v4, %v56_v3  ;;  %v46_v17 = vsel %vm44_vm0, %v20_v16, 0  ;;  %v74_v19 = vand.u32 4294901760, %v1854_v14  ;;  %v77_v20 = vand.u32 4294901760, %v1859_v15  ;;  %v1880_v22 = vld [vmem:[%s2130_s1 + $0x40] sm:$0xff]  ;;  %v1885_v23 = vld [vmem:[%s2130_s1 + $0x48] sm:$0xff]  ;;  %v1908_v29 = vld [vmem:[%s2130_s1 + $0x50] sm:$0xff] }
   0x5   :  { %v1849_v13 = vpack.c.bf16 %v65_v9, %v62_v6  ;;  %v1871_v18 = vpack.c.bf16 %v71_v12, %v68_v11  ;;  %v1875_v21 = vand.u32 4294901760, %v46_v17  ;;  %v21_v25 = vld [vmem:[%s2131_s0 + $0x8] sm:$0xff]  ;;  %v80_v27 = vand.u32 4294901760, %v1880_v22  ;;  %v1913_v30 = vld [vmem:[%s2130_s1 + $0x58] sm:$0xff]  ;;  %v1933_v37 = vld [vmem:[%s2130_s1 + $0x60] sm:$0xff] }
   0x6   :  { %1598 = vmatprep.subr.bf16.mxu1 %v1845_v10  ;;  %1682 = vmatprep.subr.bf16.mxu0 %v1845_v10  ;;  %v1901_v26 = vpack.c.bf16 %v77_v20, %v74_v19  ;;  %v83_v28 = vand.u32 4294901760, %v1885_v23  ;;  %v49_v32 = vsel %vm44_vm0, %v21_v25, 0  ;;  %v86_v34 = vand.u32 4294901760, %v1908_v29  ;;  %v1942_v41 = vld [vmem:[%s2130_s1 + $0x68] sm:$0xff]  ;;  %v36_v53 = vld [vmem:[%s2130_s1 + $0x70] sm:$0x1] }
   0x7   :  { %1600 = vmatpush3.bf16.msra.mxu1 %v1845_v10  ;;  %1684 = vmatpush3.bf16.msra.mxu0 %v1845_v10  ;;  %v1888_v24 = vsub.f32 %v46_v17, %v1875_v21  ;;  %v89_v35 = vand.u32 4294901760, %v1913_v30  ;;  %v1935_v39 = vsub.f32 %v22_v0, %v56_v3  ;;  %v1937_v40 = vsub.f32 %v23_v1, %v59_v4 }
   0x8   :  { %1602 = vmatprep.subr.bf16.mxu1 %v1849_v13  ;;  %1686 = vmatprep.subr.bf16.mxu0 %v1849_v13  ;;  %v1928_v36 = vpack.c.bf16 %v83_v28, %v80_v27  ;;  %v1944_v42 = vand.u32 4294901760, %v49_v32  ;;  %v1946_v43 = vsub.f32 %v24_v2, %v62_v6  ;;  %v92_v44 = vand.u32 4294901760, %v1933_v37 }
   0x9   :  { %v137_v31 = vand.u32 4294901760, %v1888_v24  ;;  %v1951_v45 = vsub.f32 %v25_v5, %v65_v9  ;;  %v1959_v46 = vpack.c.bf16 %v89_v35, %v86_v34  ;;  %v95_v47 = vand.u32 4294901760, %v1942_v41 }
   0xa   :  { %v158_v48 = vand.u32 4294901760, %v1935_v39  ;;  %v165_v49 = vand.u32 4294901760, %v1937_v40  ;;  %v1965_v50 = vsub.f32 %v49_v32, %v1944_v42  ;;  %v1968_v51 = vsub.f32 %v1838_v7, %v68_v11 }
   0xb   :  { %1604 = vmatpush3.bf16.msra.mxu1 %v1849_v13  ;;  %1688 = vmatpush3.bf16.msra.mxu0 %v1849_v13  ;;  %v138_v33 = vsub.f32 %v1888_v24, %v137_v31  ;;  %v1971_v52 = vsub.f32 %v1843_v8, %v71_v12  ;;  %v172_v54 = vand.u32 4294901760, %v1946_v43  ;;  %v179_v55 = vand.u32 4294901760, %v1951_v45 }
   0xc   :  { %1606 = vmatprep.subr.bf16.mxu1 %v1871_v18  ;;  %1690 = vmatprep.subr.bf16.mxu0 %v1871_v18  ;;  %v1986_v56 = vpack.c.bf16 %v95_v47, %v92_v44  ;;  %v159_v57 = vsub.f32 %v1935_v39, %v158_v48  ;;  %v166_v58 = vsub.f32 %v1937_v40, %v165_v49  ;;  %v1990_v59 = vsel %vm51_vm1, %v36_v53, 0 }
   0xd   :  { %1498 = vmatprep.mubr.f32.mxu0 %v137_v31  ;;  %v139_v38 = vand.u32 4294901760, %v138_v33  ;;  %v147_v60 = vand.u32 4294901760, %v1965_v50  ;;  %v186_v61 = vand.u32 4294901760, %v1968_v51  ;;  %v193_v62 = vand.u32 4294901760, %v1971_v52 }
   0xe   :  { %v173_v63 = vsub.f32 %v1946_v43, %v172_v54  ;;  %v180_v0 = vsub.f32 %v1951_v45, %v179_v55  ;;  %v2002_v1 = vsub.f32 %v1854_v14, %v74_v19  ;;  %v2007_v2 = vsub.f32 %v1859_v15, %v77_v20 }
   0xf   :  { %1608 = vmatpush3.bf16.msra.mxu1 %v1871_v18  ;;  %1692 = vmatpush3.bf16.msra.mxu0 %v1871_v18  ;;  %v2012_v3 = vand.u32 4294901760, %v1990_v59  ;;  %v160_v4 = vand.u32 4294901760, %v159_v57  ;;  %v167_v5 = vand.u32 4294901760, %v166_v58  ;;  %v148_v6 = vsub.f32 %v1965_v50, %v147_v60 }
  0x10   :  { %1610 = vmatprep.subr.bf16.mxu1 %v1901_v26  ;;  %1694 = vmatprep.subr.bf16.mxu0 %v1901_v26  ;;  %v187_v7 = vsub.f32 %v1968_v51, %v186_v61  ;;  %v194_v8 = vsub.f32 %v1971_v52, %v193_v62  ;;  %v174_v9 = vand.u32 4294901760, %v173_v63  ;;  %v2020_v11 = vsub.f32 %v1880_v22, %v80_v27 }
  0x11   :  { %1399 = vmatprep.mubr.f32.mxu1 %v139_v38  ;;  %v181_v12 = vand.u32 4294901760, %v180_v0  ;;  %v200_v14 = vand.u32 4294901760, %v2002_v1  ;;  %v207_v15 = vand.u32 4294901760, %v2007_v2  ;;  %v2029_v16 = vsub.f32 %v1885_v23, %v83_v28 }
  0x12   :  { %v1625_v17 = vpack.c.bf16 %v167_v5, %v160_v4  ;;  %v1709_v19 = vpack.c.bf16 %v165_v49, %v158_v48  ;;  %v149_v20 = vand.u32 4294901760, %v148_v6  ;;  %v188_v22 = vand.u32 4294901760, %v187_v7 }
  0x13   :  { %1612 = vmatpush3.bf16.msra.mxu1 %v1901_v26  ;;  %1696 = vmatpush3.bf16.msra.mxu0 %v1901_v26  ;;  %v195_v25 = vand.u32 4294901760, %v194_v8  ;;  %v1713_v27 = vpack.c.bf16 %v179_v55, %v172_v54  ;;  %v214_v31 = vand.u32 4294901760, %v2020_v11  ;;  %v2037_v32 = vsub.f32 %v1908_v29, %v86_v34 }
  0x14   :  { %1614 = vmatprep.subr.bf16.mxu1 %v1928_v36  ;;  %1698 = vmatprep.subr.bf16.mxu0 %v1928_v36  ;;  %v2042_v23 = vsub.f32 %v1913_v30, %v89_v35  ;;  %v1629_v28 = vpack.c.bf16 %v181_v12, %v174_v9  ;;  %v201_v33 = vsub.f32 %v2002_v1, %v200_v14  ;;  %v221_v48 = vand.u32 4294901760, %v2029_v16 }
  0x15   :  { %v208_v38 = vsub.f32 %v2007_v2, %v207_v15  ;;  %v1633_v29 = vpack.c.bf16 %v195_v25, %v188_v22  ;;  %v1717_v34 = vpack.c.bf16 %v193_v62, %v186_v61  ;;  %v215_v30 = vsub.f32 %v2020_v11, %v214_v31 }
  0x16   :  { %v228_v35 = vand.u32 4294901760, %v2037_v32  ;;  %v235_v49 = vand.u32 4294901760, %v2042_v23  ;;  %v2055_v53 = vsub.f32 %v1933_v37, %v92_v44  ;;  %v202_v54 = vand.u32 4294901760, %v201_v33 }
  0x17   :  { %1616 = vmatpush3.bf16.msra.mxu1 %v1928_v36  ;;  %1700 = vmatpush3.bf16.msra.mxu0 %v1928_v36  ;;  %v209_v55 = vand.u32 4294901760, %v208_v38  ;;  %v222_v57 = vsub.f32 %v2029_v16, %v221_v48  ;;  %v2061_v58 = vsub.f32 %v1942_v41, %v95_v47  ;;  %v216_v63 = vand.u32 4294901760, %v215_v30 }
  0x18   :  { %1618 = vmatprep.subr.bf16.mxu1 %v1959_v46  ;;  %1702 = vmatprep.subr.bf16.mxu0 %v1959_v46  ;;  %v229_v37 = vsub.f32 %v2037_v32, %v228_v35  ;;  %v236_v44 = vsub.f32 %v2042_v23, %v235_v49  ;;  %v242_v61 = vand.u32 4294901760, %v2055_v53  ;;  %v1725_v47 = vpack.c.bf16 %v221_v48, %v214_v31 }
  0x19   :  { %v1637_v62 = vpack.c.bf16 %v209_v55, %v202_v54  ;;  %v223_v0 = vand.u32 4294901760, %v222_v57  ;;  %v249_v41 = vand.u32 4294901760, %v2061_v58  ;;  %v2073_v9 = vsub.f32 %v1990_v59, %v2012_v3 }
  0x1a   :  { %v230_v4 = vand.u32 4294901760, %v229_v37  ;;  %v243_v5 = vsub.f32 %v2055_v53, %v242_v61  ;;  %v237_v7 = vand.u32 4294901760, %v236_v44  ;;  %v1729_v12 = vpack.c.bf16 %v235_v49, %v228_v35 }
  0x1b   :  { %1620 = vmatpush3.bf16.msra.mxu1 %v1959_v46  ;;  %1704 = vmatpush3.bf16.msra.mxu0 %v1959_v46  ;;  %v1641_v6 = vpack.c.bf16 %v223_v0, %v216_v63  ;;  %v250_v8 = vsub.f32 %v2061_v58, %v249_v41  ;;  %v1733_v22 = vpack.c.bf16 %v249_v41, %v242_v61 }
  0x1c   :  { %1622 = vmatprep.subr.bf16.mxu1 %v1986_v56  ;;  %1706 = vmatprep.subr.bf16.mxu0 %v1986_v56  ;;  %v1657_v31 = vpack.c.bf16 %v1951_v45, %v1946_v43 }
  0x1f   :  { %1624 = vmatpush3.bf16.msra.mxu1 %v1986_v56  ;;  %1708 = vmatpush3.bf16.msra.mxu0 %v1986_v56 }
  0x20   :  { %1397 = vmatprep.subr.mxu1 %v2012_v3  ;;  %1496 = vmatprep.subr.mxu0 %v2012_v3 }
  0x23   :  { %1398 = vmatpush3.msra.mxu1 %v2012_v3  ;;  %1497 = vmatpush3.msra.mxu0 %v2012_v3 }
  0x24   :  { %1626 = vmatprep.subr.bf16.mxu1 %v1625_v17  ;;  %1710 = vmatprep.subr.bf16.mxu0 %v1709_v19 }
  0x25   :  { %1400 = vmatmul.mubr.f32.vlgmr.msra.gmra.mrb[0].mxu1 %v149_v20  ;;  %1499 = vmatmul.mubr.f32.vlgmr.msra.gmra.mrb[0].mxu0 %v147_v60  ;;  %v1721_v60 = vpack.c.bf16 %v207_v15, %v200_v14  ;;  %v1645_v14 = vpack.c.bf16 %v237_v7, %v230_v4  ;;  %v244_v15 = vand.u32 4294901760, %v243_v5 }
  0x26   :  { %1628 = vmatpush3.bf16.msra.mxu1 %v1625_v17  ;;  %1712 = vmatpush3.bf16.msra.mxu0 %v1709_v19  ;;  %v251_v17 = vand.u32 4294901760, %v250_v8  ;;  %v256_v19 = vand.u32 4294901760, %v2073_v9 }
  0x27   :  { %1630 = vmatprep.subr.bf16.mxu1 %v1629_v28  ;;  %1714 = vmatprep.subr.bf16.mxu0 %v1713_v27 }
  0x28   :  { %1432 = vmatprep.mubr.f32.mxu1 %v1875_v21  ;;  %1531 = vmatprep.mubr.f32.mxu0 %v1875_v21  ;;  %v1649_v20 = vpack.c.bf16 %v251_v17, %v244_v15  ;;  %v257_v25 = vsub.f32 %v2073_v9, %v256_v19 }
  0x2a   :  { %1632 = vmatpush3.bf16.msra.mxu1 %v1629_v28  ;;  %1716 = vmatpush3.bf16.msra.mxu0 %v1713_v27  ;;  %v258_v59 = vand.u32 4294901760, %v257_v25  ;;  %v1653_v27 = vpack.c.bf16 %v1937_v40, %v1935_v39  ;;  %v1661_v39 = vpack.c.bf16 %v1971_v52, %v1968_v51  ;;  %v1665_v40 = vpack.c.bf16 %v2007_v2, %v2002_v1 }
  0x2b   :  { %1634 = vmatprep.subr.bf16.mxu1 %v1633_v29  ;;  %1718 = vmatprep.subr.bf16.mxu0 %v1717_v34 }
  0x2e   :  { %1636 = vmatpush3.bf16.msra.mxu1 %v1633_v29  ;;  %1720 = vmatpush3.bf16.msra.mxu0 %v1717_v34 }
  0x2f   :  { %1638 = vmatprep.subr.bf16.mxu1 %v1637_v62  ;;  %1722 = vmatprep.subr.bf16.mxu0 %v1721_v60 }
  0x32   :  { %1640 = vmatpush3.bf16.msra.mxu1 %v1637_v62  ;;  %1724 = vmatpush3.bf16.msra.mxu0 %v1721_v60  ;;  %v1248_v60 = vld [vmem:[%s2134_s4] ss:$0 sm:$0xff] }
  0x33   :  { %1642 = vmatprep.subr.bf16.mxu1 %v1641_v6  ;;  %1726 = vmatprep.subr.bf16.mxu0 %v1725_v47 }
  0x36   :  { %1644 = vmatpush3.bf16.msra.mxu1 %v1641_v6  ;;  %1728 = vmatpush3.bf16.msra.mxu0 %v1725_v47 }
  0x37   :  { %1646 = vmatprep.subr.bf16.mxu1 %v1645_v14  ;;  %1730 = vmatprep.subr.bf16.mxu0 %v1729_v12 }
  0x3a   :  { %1648 = vmatpush3.bf16.msra.mxu1 %v1645_v14  ;;  %1732 = vmatpush3.bf16.msra.mxu0 %v1729_v12 }
  0x3b   :  { %1650 = vmatprep.subr.bf16.mxu1 %v1649_v20  ;;  %1734 = vmatprep.subr.bf16.mxu0 %v1733_v22 }
  0x3e   :  { %1652 = vmatpush3.bf16.msra.mxu1 %v1649_v20  ;;  %1736 = vmatpush3.bf16.msra.mxu0 %v1733_v22 }
  0x3f   :  { %1430 = vmatprep.subr.mxu1 %v258_v59  ;;  %1529 = vmatprep.subr.mxu0 %v256_v19 }
  0x42   :  { %1431 = vmatpush3.msra.mxu1 %v258_v59  ;;  %1530 = vmatpush3.msra.mxu0 %v256_v19 }
  0x43   :  { %1654 = vmatprep.subr.bf16.mxu1 %v1653_v27  ;;  %1738 = vmatprep.subr.bf16.mxu0 %v1845_v10 }
  0x44   :  { %1433 = vmatmul.mubr.f32.vlgmr.msra.gmra.mrb[0].mxu1 %v1944_v42  ;;  %1532 = vmatmul.mubr.f32.vlgmr.msra.gmra.mrb[0].mxu0 %v1944_v42 }
  0x45   :  { %1656 = vmatpush3.bf16.msra.mxu1 %v1653_v27  ;;  %1740 = vmatpush3.bf16.msra.mxu0 %v1845_v10  ;;  %v1669_v10 = vpack.c.bf16 %v2029_v16, %v2020_v11 }
  0x46   :  { %1658 = vmatprep.subr.bf16.mxu1 %v1657_v31  ;;  %1742 = vmatprep.subr.bf16.mxu0 %v1849_v13 }
  0x47   :  { %1465 = vmatprep.mubr.f32.mxu1 %v1888_v24  ;;  %1564 = vmatprep.mubr.f32.mxu0 %v1875_v21  ;;  %v730_v21 = vld [vmem:[%s2132_s3] sm:$0xff] }
  0x48   :  { %v746_v24 = vand.u32 4294901760, %v730_v21 }
  0x49   :  { %1660 = vmatpush3.bf16.msra.mxu1 %v1657_v31  ;;  %1744 = vmatpush3.bf16.msra.mxu0 %v1849_v13  ;;  %v1673_v13 = vpack.c.bf16 %v2042_v23, %v2037_v32 }
  0x4a   :  { %1662 = vmatprep.subr.bf16.mxu1 %v1661_v39  ;;  %1746 = vmatprep.subr.bf16.mxu0 %v1871_v18 }
  0x4d   :  { %1664 = vmatpush3.bf16.msra.mxu1 %v1661_v39  ;;  %1748 = vmatpush3.bf16.msra.mxu0 %v1871_v18  ;;  %v1677_v18 = vpack.c.bf16 %v2061_v58, %v2055_v53 }
  0x4e   :  { %1666 = vmatprep.subr.bf16.mxu1 %v1665_v40  ;;  %1750 = vmatprep.subr.bf16.mxu0 %v1901_v26 }
  0x51   :  { %1668 = vmatpush3.bf16.msra.mxu1 %v1665_v40  ;;  %1752 = vmatpush3.bf16.msra.mxu0 %v1901_v26  ;;  %v833_v26 = vsub.f32 %v730_v21, %v746_v24 }
  0x52   :  { %1670 = vmatprep.subr.bf16.mxu1 %v1669_v10  ;;  %1754 = vmatprep.subr.bf16.mxu0 %v1928_v36 }
  0x55   :  { %1672 = vmatpush3.bf16.msra.mxu1 %v1669_v10  ;;  %1756 = vmatpush3.bf16.msra.mxu0 %v1928_v36  ;;  %v834_v36 = vand.u32 4294901760, %v833_v26 }
  0x56   :  { %1674 = vmatprep.subr.bf16.mxu1 %v1673_v13  ;;  %1758 = vmatprep.subr.bf16.mxu0 %v1959_v46 }
  0x57   :  { %v835_v43 = vsub.f32 %v833_v26, %v834_v36 }
  0x59   :  { %1676 = vmatpush3.bf16.msra.mxu1 %v1673_v13  ;;  %1760 = vmatpush3.bf16.msra.mxu0 %v1959_v46  ;;  %v836_v45 = vand.u32 4294901760, %v835_v43  ;;  %v1247_v46 = vld [vmem:[%s2133_s2] ss:$0 sm:$0xff] }
  0x5a   :  { %1678 = vmatprep.subr.bf16.mxu1 %v1677_v18  ;;  %1762 = vmatprep.subr.bf16.mxu0 %v1986_v56 }
  0x5d   :  { %1680 = vmatpush3.bf16.msra.mxu1 %v1677_v18  ;;  %1764 = vmatpush3.bf16.msra.mxu0 %v1986_v56 }
  0x5e   :  { %1463 = vmatprep.subr.mxu1 %v2073_v9  ;;  %1562 = vmatprep.subr.mxu0 %v2012_v3 }
  0x61   :  { %1464 = vmatpush3.msra.mxu1 %v2073_v9  ;;  %1563 = vmatpush3.msra.mxu0 %v2012_v3 }
  0x62   :  { %1466 = vmatmul.mubr.f32.vlgmr.msra.gmra.mrb[0].mxu1 %v1965_v50  ;;  %1565 = vmatmul.mubr.f32.vlgmr.msra.gmra.mrb[0].mxu0 %v1944_v42 }
  0x63   :  { %1582 = vmatprep.subr.mxu1 %v746_v24  ;;  %1567 = vmatprep.subr.mxu0 %v746_v24 }
  0x64   :  { %1583 = vmatpush3.msra.mxu1 %v746_v24  ;;  %1568 = vmatpush3.msra.mxu0 %v746_v24 }
  0x65   :  { %1587 = vmatprep.subr.mxu1 %v834_v36  ;;  %1572 = vmatprep.subr.mxu0 %v836_v45 }
 0x135   :  { %v1467_v42 = vpop.f32.mrb[0].mxu1  ;;  %v1566_v50 = vpop.f32.mrb[0].mxu0 }
 0x136   :  { %v1765_v51 = vadd.f32 %v1467_v42, %v1247_v46  ;;  %v405_v52 = vpop.f32.mrb[1].mxu1  ;;  %v716_v56 = vpop.f32.mrb[1].mxu0 }
 0x137   :  { %v1767_v1 = vadd.f32 %v1247_v46, %v405_v52 }
 0x138   :  { %v1766_v2 = vadd.f32 %v1765_v51, %v1566_v50 }
 0x139   :  { %v1768_v3 = vadd.f32 %v1767_v1, %v716_v56 }
 0x13a   :  { %v727_v11 = vmul.f32 0.2, %v1766_v2 }
 0x13b   :  { %v726_v16 = vmul.f32 0.2, %v1768_v3 }
 0x13c   :  { %v729_v32 = vmax.f32 %v1766_v2, %v727_v11 }
 0x13d   :  { %v728_v23 = vmax.f32 %v1768_v3, %v726_v16 }
 0x13e   :  { %v743_v28 = vsel %vm738_vm2, %v729_v32, 0 }
 0x13f   :  { %v821_v33 = vand.u32 4294901760, %v743_v28  ;;  %v740_v38 = vsel %vm738_vm2, %v728_v23, 0 }
 0x140   :  { %v811_v48 = vand.u32 4294901760, %v740_v38 }
 0x141   :  { %v822_v29 = vsub.f32 %v743_v28, %v821_v33 }
 0x142   :  { %v812_v34 = vsub.f32 %v740_v38, %v811_v48 }
 0x143   :  { %v823_v30 = vand.u32 4294901760, %v822_v29 }
 0x144   :  { %v813_v35 = vand.u32 4294901760, %v812_v34 }
 0x145   :  { %v824_v49 = vsub.f32 %v822_v29, %v823_v30 }
 0x146   :  { %1584 = vmatprep.mubr.f32.mxu1 %v813_v35  ;;  %v814_v53 = vsub.f32 %v812_v34, %v813_v35 }
 0x147   :  { %1585 = vmatmul.mubr.f32.vlgmr.msra.gmra.mrb[2].mxu1 %v823_v30  ;;  %v825_v55 = vand.u32 4294901760, %v824_v49 }
 0x148   :  { %1589 = vmatprep.mubr.f32.mxu1 %v811_v48  ;;  %v815_v54 = vand.u32 4294901760, %v814_v53  ;;  %1588 = vmatpush3.msra.mxu1 %v834_v36 }
 0x149   :  { %1592 = vmatprep.subr.mxu1 %v746_v24 }
 0x14a   :  { %1569 = vmatprep.mubr.f32.mxu0 %v815_v54 }
 0x14b   :  { %1570 = vmatmul.mubr.f32.vlgmr.msra.gmra.mrb[2].mxu0 %v825_v55 }
 0x14c   :  { %1573 = vmatpush3.msra.mxu0 %v836_v45  ;;  %1574 = vmatprep.mubr.f32.mxu0 %v811_v48 }
 0x14d   :  { %1577 = vmatprep.subr.mxu0 %v833_v26 }
 0x14f   :  { %1590 = vmatmul.mubr.f32.vlgmr.msra.gmra.mrb[2].mxu1 %v821_v33 }
 0x150   :  { %1594 = vmatprep.mubr.f32.mxu1 %v811_v48  ;;  %1593 = vmatpush3.msra.mxu1 %v746_v24 }
 0x153   :  { %1575 = vmatmul.mubr.f32.vlgmr.msra.gmra.mrb[2].mxu0 %v821_v33 }
 0x154   :  { %1578 = vmatpush3.msra.mxu0 %v833_v26  ;;  %1579 = vmatprep.mubr.f32.mxu0 %v812_v34 }
 0x157   :  { %1595 = vmatmul.mubr.f32.vlgmr.msra.gmra.mrb[2].mxu1 %v821_v33 }
 0x15b   :  { %1580 = vmatmul.mubr.f32.vlgmr.msra.gmra.mrb[2].mxu0 %v822_v29 }
 0x22a   :  { %v1596_v57 = vpop.f32.mrb[2].mxu1 }
 0x22b   :  { %v1224_v58 = vpop.f32.mrb[3].mxu1 }
 0x22e   :  { %v1581_v37 = vpop.f32.mrb[2].mxu0 }
 0x22f   :  { %v1769_v44 = vadd.f32 %v1581_v37, %v1248_v60  ;;  %v983_v61 = vpop.f32.mrb[3].mxu0 }
 0x230   :  { %v1771_v62 = vadd.f32 %v1248_v60, %v983_v61 }
 0x231   :  { %v1770_v63 = vadd.f32 %v1769_v44, %v1596_v57 }
 0x232   :  { %v1772_v0 = vadd.f32 %v1771_v62, %v1224_v58 }
 0x233   :  { %1789 = vtanh.f32 %v1770_v63 }
 0x234   :  { %1791 = vtanh.f32 %v1772_v0 }
 0x23d   :  { %v1790_v41 = vpop.eup %1789 }
 0x23e   :  { %v1792_v47 = vpop.eup %1791  ;;  %v1237_v4 = vmul.f32 0.5, %v1790_v41 }
 0x23f   :  { %v1236_v5 = vmul.f32 0.5, %v1792_v47 }
 0x240   :  { %v1239_v6 = vadd.f32 0.5, %v1237_v4 }
 0x241   :  { %v1238_v7 = vadd.f32 0.5, %v1236_v5 }
 0x242   :  { %1242 = vst.msk [vmem:[%s2135_s5 + $0x8] sm:$0xff] %vm1240_vm3, %v1239_v6 }
 0x243   :  { %1241 = vst.msk [vmem:[%s2135_s5] sm:$0xff] %vm1240_vm3, %v1238_v7 }

</bundles_post_ra>
